<compile_context>
chip_gen: v7x
topology: tpu7x:2x2x1
jax: 0.10.0
libtpu: 0.0.40
codegen_flags: <defaults>
</compile_context>

<pallas_src>
import collections
import functools
import math

import jax
import jax.numpy as jnp
from jax.experimental import pallas as pl
from jax.experimental.pallas import tpu as pltpu


def _round_up(x, m):
    return ((x + m - 1) // m) * m


# Activation container.  `data` is (N, OH*WQ, C) bf16 when `wide` (valid data
# in columns [0, OW) of every WQ-wide row), else plain NHWC (N, OH, OW, C).
Act = collections.namedtuple("Act", ["data", "oh", "ow", "wq", "wide"])


def _to_nhwc(act):
    if not act.wide:
        return act.data
    n = act.data.shape[0]
    c = act.data.shape[-1]
    x = act.data.reshape(n, act.oh, act.wq, c)
    return x[:, :, :act.ow, :]


def _to_wide_flat(act, oh, ow, wq):
    """Return (N, oh*wq, C) bf16 aligned with a tap-conv accumulator."""
    if act.wide and act.oh == oh and act.ow == ow and act.wq == wq:
        return act.data
    x = _to_nhwc(act)
    assert x.shape[1] == oh and x.shape[2] == ow
    x = jnp.pad(x, ((0, 0), (0, 0), (0, wq - ow), (0, 0)))
    return x.reshape(x.shape[0], oh * wq, x.shape[-1])


# ----------------------------- Pallas kernels -------------------------------

def _matmul_bn_kernel(relu, a_ref, b_ref, s_ref, c_ref, o_ref):
    """Single-shot (full-K) matmul fused with BN affine and optional ReLU."""
    y = jnp.dot(a_ref[...], b_ref[...], preferred_element_type=jnp.float32)
    y = y * s_ref[...] + c_ref[...]
    if relu:
        y = jnp.maximum(y, 0.0)
    o_ref[...] = y.astype(o_ref.dtype)


def _tap_conv_kernel(taps, tb, hq, wq, cin, relu, has_res,
                     x_ref, w_ref, s_ref, c_ref, *rest):
    """Direct conv: accumulate one shifted matmul per kernel tap.

    x_ref: (n_planes*HQ*WQ, Cin) -- whole padded image, resident across the
           row-band / cout-tile grid axes.
    w_ref: (kh*kw*Cin, TN); tap t owns rows [t*Cin, (t+1)*Cin).
    Output rows of the band are flattened as (row * WQ + col); columns
    >= OW are don't-care (they absorb the horizontal tap shift spill).
    """
    if has_res:
        r_ref, o_ref, acc_ref = rest
    else:
        o_ref, acc_ref = rest
    band = pl.program_id(2)
    tbw = tb * wq
    base = band * tbw
    for t, (plane, dy, dx) in enumerate(taps):
        start = (plane * hq + dy) * wq + dx + base
        a = x_ref[pl.ds(start, tbw), :]
        wt = w_ref[pl.ds(t * cin, cin), :]
        p = jnp.dot(a, wt, preferred_element_type=jnp.float32)
        if t == 0:
            acc_ref[...] = p
        else:
            acc_ref[...] += p
    y = acc_ref[...] * s_ref[...] + c_ref[...]
    if has_res:
        y = y + r_ref[...].astype(jnp.float32)
    if relu:
        y = jnp.maximum(y, 0.0)
    o_ref[...] = y.astype(o_ref.dtype)


def _tap_maxpool_kernel(taps, tb, hq, wq, x_ref, o_ref):
    """3x3 / stride-2 max pool over the phase-decomposed resident image."""
    band = pl.program_id(1)
    tbw = tb * wq
    base = band * tbw
    acc = None
    for plane, dy, dx in taps:
        start = (plane * hq + dy) * wq + dx + base
        v = x_ref[pl.ds(start, tbw), :]
        acc = v if acc is None else jnp.maximum(acc, v)
    o_ref[...] = acc.astype(o_ref.dtype)


# ------------------------------ tile selection -------------------------------

_ACC_CAP = 32768  # max elements of the per-step (rows x TN) f32 tile (~128 KiB)


def _pick_tn(cout):
    return min(cout, 256)


def _pick_tb(oh, wq, tn):
    """Largest row-band TB dividing OH with TB*WQ*TN under the cap; prefer a
    sublane-packing-friendly (TB*WQ % 16 == 0) choice."""
    best, best16 = 1, 0
    for t in range(1, oh + 1):
        if oh % t:
            continue
        if t > 1 and t * wq * tn > _ACC_CAP:
            continue
        best = t
        if (t * wq) % 16 == 0:
            best16 = t
    return best16 if best16 else best


def _pick_tm(m, tn):
    cap = max(8, _ACC_CAP // tn)
    for t in (256, 128, 64, 32, 16, 8):
        if t <= cap and m % t == 0:
            return t, m
    return 128, _round_up(m, 128)   # rare fallback: pad M


# ------------------------------ Pallas wrappers ------------------------------

def matmul_bn(a, b, scale, bias, relu):
    """out = relu?((a @ b) * scale + bias); a:(M,K) bf16, b:(K,Cout) bf16."""
    m, k = a.shape
    k2, cout = b.shape
    assert k == k2
    tn = _pick_tn(cout)
    tm, mp = _pick_tm(m, tn)
    if mp != m:
        a = jnp.pad(a, ((0, mp - m), (0, 0)))
    out = pl.pallas_call(
        functools.partial(_matmul_bn_kernel, relu),
        out_shape=jax.ShapeDtypeStruct((mp, cout), jnp.bfloat16),
        grid_spec=pltpu.PrefetchScalarGridSpec(
            num_scalar_prefetch=0,
            grid=(mp // tm, cout // tn),
            in_specs=[
                pl.BlockSpec((tm, k), lambda i, j: (i, 0)),
                pl.BlockSpec((k, tn), lambda i, j: (0, j)),
                pl.BlockSpec((1, tn), lambda i, j: (0, j)),
                pl.BlockSpec((1, tn), lambda i, j: (0, j)),
            ],
            out_specs=pl.BlockSpec((tm, tn), lambda i, j: (i, j)),
        ),
        compiler_params=pltpu.CompilerParams(
            dimension_semantics=("parallel", "parallel")),
    )(a, b,
      scale.reshape(1, cout).astype(jnp.float32),
      bias.reshape(1, cout).astype(jnp.float32))
    return out[:m] if mp != m else out


def _prep_tap_input(act, kh, kw, stride, pad):
    """Spatially pad (and 2x2 phase-decompose for stride 2), align the row
    stride to a multiple of 8 and flatten to (N, n_planes*HQ*WQ, C) bf16 so
    every kernel tap is a single shifted contiguous VMEM load."""
    x = _to_nhwc(act).astype(jnp.bfloat16)
    n, h, w, c = x.shape
    oh = (h + 2 * pad - kh) // stride + 1
    ow = (w + 2 * pad - kw) // stride + 1
    xp = jnp.pad(x, ((0, 0), (pad, pad), (pad, pad), (0, 0)))
    hp, wp = h + 2 * pad, w + 2 * pad
    if stride == 1:
        dy_max, dx_max = kh - 1, kw - 1
        hq = oh + dy_max + 1
        wq = _round_up(max(wp, ow + dx_max), 8)
        xp = jnp.pad(xp, ((0, 0), (0, hq - hp), (0, wq - wp), (0, 0)))
        planes = xp[:, None]                        # (N, 1, HQ, WQ, C)
        taps = tuple((0, ki, kj) for ki in range(kh) for kj in range(kw))
    else:
        assert stride == 2
        hp2, wp2 = hp + (hp % 2), wp + (wp % 2)
        xp = jnp.pad(xp, ((0, 0), (0, hp2 - hp), (0, wp2 - wp), (0, 0)))
        hph, wph = hp2 // 2, wp2 // 2
        dy_max, dx_max = (kh - 1) // 2, (kw - 1) // 2
        hq = max(hph, oh + dy_max) + 1
        wq = _round_up(max(wph, ow + dx_max), 8)
        planes = jnp.stack(
            [xp[:, a::2, b::2, :] for a in range(2) for b in range(2)], axis=1)
        planes = jnp.pad(
            planes, ((0, 0), (0, 0), (0, hq - hph), (0, wq - wph), (0, 0)))
        taps = tuple(((ki % 2) * 2 + (kj % 2), ki // 2, kj // 2)
                     for ki in range(kh) for kj in range(kw))
    n_planes = planes.shape[1]
    xflat = planes.reshape(n, n_planes * hq * wq, c)
    return xflat, taps, hq, wq, oh, ow


def tap_conv(act, wmat, scale, bias, kh, kw, stride, pad, relu, residual=None):
    """Fused Conv2d (3x3, stride 1/2) + BN (+ residual) (+ ReLU)."""
    xflat, taps, hq, wq, oh, ow = _prep_tap_input(act, kh, kw, stride, pad)
    n, lflat, cin = xflat.shape
    ktot, cout = wmat.shape
    assert ktot == kh * kw * cin
    tn = _pick_tn(cout)
    tb = _pick_tb(oh, wq, tn)
    tbw = tb * wq
    has_res = residual is not None

    inputs = [xflat, wmat,
              scale.reshape(1, cout).astype(jnp.float32),
              bias.reshape(1, cout).astype(jnp.float32)]
    in_specs = [
        pl.BlockSpec((None, lflat, cin), lambda b, j, r: (b, 0, 0)),
        pl.BlockSpec((ktot, tn), lambda b, j, r: (0, j)),
        pl.BlockSpec((1, tn), lambda b, j, r: (0, j)),
        pl.BlockSpec((1, tn), lambda b, j, r: (0, j)),
    ]
    if has_res:
        inputs.append(_to_wide_flat(residual, oh, ow, wq))
        in_specs.append(pl.BlockSpec((None, tbw, tn), lambda b, j, r: (b, r, j)))

    kernel = functools.partial(
        _tap_conv_kernel, taps, tb, hq, wq, cin, relu, has_res)
    out = pl.pallas_call(
        kernel,
        out_shape=jax.ShapeDtypeStruct((n, oh * wq, cout), jnp.bfloat16),
        grid_spec=pltpu.PrefetchScalarGridSpec(
            num_scalar_prefetch=0,
            grid=(n, cout // tn, oh // tb),
            in_specs=in_specs,
            out_specs=pl.BlockSpec((None, tbw, tn), lambda b, j, r: (b, r, j)),
            scratch_shapes=[pltpu.VMEM((tbw, tn), jnp.float32)],
        ),
        compiler_params=pltpu.CompilerParams(
            dimension_semantics=("parallel", "parallel", "arbitrary")),
    )(*inputs)
    return Act(out, oh, ow, wq, True)


def maxpool_3x3_s2_p1(act):
    """MaxPool2d(3, stride=2, padding=1); input is post-ReLU so zero padding
    is exact."""
    xflat, taps, hq, wq, oh, ow = _prep_tap_input(act, 3, 3, 2, 1)
    n, lflat, c = xflat.shape
    tb = _pick_tb(oh, wq, c)
    tbw = tb * wq
    out = pl.pallas_call(
        functools.partial(_tap_maxpool_kernel, taps, tb, hq, wq),
        out_shape=jax.ShapeDtypeStruct((n, oh * wq, c), jnp.bfloat16),
        grid_spec=pltpu.PrefetchScalarGridSpec(
            num_scalar_prefetch=0,
            grid=(n, oh // tb),
            in_specs=[pl.BlockSpec((None, lflat, c), lambda b, r: (b, 0, 0))],
            out_specs=pl.BlockSpec((None, tbw, c), lambda b, r: (b, r, 0)),
        ),
        compiler_params=pltpu.CompilerParams(
            dimension_semantics=("parallel", "arbitrary")),
    )(xflat)
    return Act(out, oh, ow, wq, True)


# ------------------------------- JAX glue ------------------------------------

def _im2col(x, kh, kw, stride, pad):
    """NHWC im2col (conv1 only), bf16, K padded to a multiple of 8."""
    n, h, w, c = x.shape
    xp = jnp.pad(x, ((0, 0), (pad, pad), (pad, pad), (0, 0)))
    oh = (h + 2 * pad - kh) // stride + 1
    ow = (w + 2 * pad - kw) // stride + 1
    taps = []
    for i in range(kh):
        for j in range(kw):
            taps.append(jax.lax.slice(
                xp, (0, i, j, 0),
                (n, i + stride * (oh - 1) + 1, j + stride * (ow - 1) + 1, c),
                (1, stride, stride, 1)))
    patches = jnp.stack(taps, axis=3)               # (N, OH, OW, kh*kw, C)
    a = patches.reshape(n * oh * ow, kh * kw * c)
    kpad = _round_up(kh * kw * c, 8)
    if kpad != kh * kw * c:
        a = jnp.pad(a, ((0, 0), (0, kpad - kh * kw * c)))
    return a.astype(jnp.bfloat16), (n, oh, ow)


def conv1_7x7(x_nhwc, wmat, scale, bias):
    a, (n, oh, ow) = _im2col(x_nhwc, 7, 7, 2, 3)
    out = matmul_bn(a, wmat, scale, bias, relu=True)
    return Act(out.reshape(n, oh, ow, wmat.shape[1]), oh, ow, 0, False)


def downsample_1x1(act, wmat, scale, bias, stride):
    x = _to_nhwc(act)
    if stride > 1:
        x = x[:, ::stride, ::stride, :]
    n, oh, ow, c = x.shape
    a = x.reshape(n * oh * ow, c).astype(jnp.bfloat16)
    out = matmul_bn(a, wmat, scale, bias, relu=False)
    return Act(out.reshape(n, oh, ow, wmat.shape[1]), oh, ow, 0, False)


# --------------------------- parameter construction --------------------------

def _kaiming_conv(key, cout, cin, kh, kw):
    # nn.init.kaiming_normal_(mode='fan_out', nonlinearity='relu')
    std = math.sqrt(2.0 / (kh * kw * cout))
    return std * jax.random.normal(key, (cout, cin, kh, kw), jnp.float32)


def _conv_weight_matrix(w):
    """(Cout,Cin,kh,kw) -> (kh*kw*Cin rounded to 8, Cout) bf16, tap-major."""
    cout, cin, kh, kw = w.shape
    b = jnp.transpose(w, (2, 3, 1, 0)).reshape(kh * kw * cin, cout)
    kpad = _round_up(kh * kw * cin, 8)
    if kpad != b.shape[0]:
        b = jnp.pad(b, ((0, kpad - b.shape[0]), (0, 0)))
    return b.astype(jnp.bfloat16)


def _bn_affine(c, eps=1e-5):
    # PyTorch init: gamma=1, beta=0, running_mean=0, running_var=1 (eval mode).
    gamma = jnp.ones((c,), jnp.float32)
    beta = jnp.zeros((c,), jnp.float32)
    mean = jnp.zeros((c,), jnp.float32)
    var = jnp.ones((c,), jnp.float32)
    scale = gamma / jnp.sqrt(var + eps)
    bias = beta - mean * scale
    return scale, bias


def init_resnet18_params(key, num_input_images=1):
    keys = iter(jax.random.split(key, 64))
    p = {}
    p['conv1_w'] = _conv_weight_matrix(
        _kaiming_conv(next(keys), 64, 3 * num_input_images, 7, 7))
    p['bn1_scale'], p['bn1_bias'] = _bn_affine(64)
    inplanes = 64
    for li, (planes, stride) in enumerate(
            [(64, 1), (128, 2), (256, 2), (512, 2)], start=1):
        blocks = []
        for bi in range(2):            # resnet18: [2, 2, 2, 2] BasicBlocks
            s = stride if bi == 0 else 1
            blk = {
                'w1': _conv_weight_matrix(
                    _kaiming_conv(next(keys), planes, inplanes, 3, 3)),
                'w2': _conv_weight_matrix(
                    _kaiming_conv(next(keys), planes, planes, 3, 3)),
            }
            blk['s1'], blk['b1'] = _bn_affine(planes)
            blk['s2'], blk['b2'] = _bn_affine(planes)
            if bi == 0 and (s != 1 or inplanes != planes):
                blk['wd'] = _conv_weight_matrix(
                    _kaiming_conv(next(keys), planes, inplanes, 1, 1))
                blk['sd'], blk['bd'] = _bn_affine(planes)
            blocks.append(blk)
            inplanes = planes
        p['layer{}'.format(li)] = blocks
    return p


# -------------------------------- forward ------------------------------------

def _basic_block(act, blk, stride):
    identity = act
    out = tap_conv(act, blk['w1'], blk['s1'], blk['b1'],
                   3, 3, stride, 1, relu=True)
    if 'wd' in blk:
        identity = downsample_1x1(act, blk['wd'], blk['sd'], blk['bd'], stride)
    out = tap_conv(out, blk['w2'], blk['s2'], blk['b2'],
                   3, 3, 1, 1, relu=True, residual=identity)
    return out


def resnet_encoder_forward(params, input_image_nchw):
    """Matches ResnetEncoder.forward for num_layers=18, num_input_images=1."""
    x = jnp.transpose(input_image_nchw, (0, 2, 3, 1))      # NCHW -> NHWC
    x = (x - 0.45) / 0.225
    feats = [conv1_7x7(x, params['conv1_w'],
                       params['bn1_scale'], params['bn1_bias'])]
    act = maxpool_3x3_s2_p1(feats[0])
    layer_strides = {1: 1, 2: 2, 3: 2, 4: 2}
    for li in (1, 2, 3, 4):
        blocks = params['layer{}'.format(li)]
        act = _basic_block(act, blocks[0], layer_strides[li])
        act = _basic_block(act, blocks[1], 1)
        feats.append(act)
    return [jnp.transpose(_to_nhwc(f).astype(jnp.float32), (0, 3, 1, 2))
            for f in feats]


if __name__ == "__main__":
    key = jax.random.PRNGKey(0)
    pkey, xkey = jax.random.split(key)
    params = init_resnet18_params(pkey)

    # small input consistent with the module: batch=2, 3 channels, 64x64
    x = jax.random.uniform(xkey, (2, 3, 64, 64), jnp.float32)

    feats = resnet_encoder_forward(params, x)
    feats = [jax.block_until_ready(f) for f in feats]

    expected_ch = [64, 64, 128, 256, 512]
    expected_hw = [32, 16, 8, 4, 2]
    for f, c, s in zip(feats, expected_ch, expected_hw):
        assert f.shape == (2, c, s, s), f.shape
        assert bool(jnp.all(jnp.isfinite(f)))
    print("KERNEL_OK")
</pallas_src>

<mosaic_0001>
module attributes {stable_mosaic.version = 11 : i64} {
  func.func @_matmul_bn_kernel(%arg0: i32, %arg1: i32, %arg2: memref<256x152xbf16, #tpu.memory_space<vmem>>, %arg3: memref<152x64xbf16, #tpu.memory_space<vmem>>, %arg4: memref<1x64xf32, #tpu.memory_space<vmem>>, %arg5: memref<1x64xf32, #tpu.memory_space<vmem>>, %arg6: memref<256x64xbf16, #tpu.memory_space<vmem>>) attributes {dimension_semantics = [#tpu.dimension_semantics<parallel>, #tpu.dimension_semantics<parallel>], iteration_bounds = array<i64: 8, 1>, scalar_prefetch = 0 : i64, scratch_operands = 0 : i64, tpu.core_type = #tpu.core_type<tc>, window_params = [{transform_indices = @transform_0, window_bounds = array<i64: 256, 152>}, {transform_indices = @transform_1, window_bounds = array<i64: 152, 64>}, {transform_indices = @transform_2, window_bounds = array<i64: 1, 64>}, {transform_indices = @transform_3, window_bounds = array<i64: 1, 64>}, {transform_indices = @transform_4, window_bounds = array<i64: 256, 64>}]} {
    %c0 = arith.constant 0 : index
    %c0_0 = arith.constant 0 : index
    %0 = vector.load %arg2[%c0, %c0_0] : memref<256x152xbf16, #tpu.memory_space<vmem>>, vector<256x152xbf16>
    %c0_1 = arith.constant 0 : index
    %c0_2 = arith.constant 0 : index
    %1 = vector.load %arg3[%c0_1, %c0_2] : memref<152x64xbf16, #tpu.memory_space<vmem>>, vector<152x64xbf16>
    %cst = arith.constant dense<0.000000e+00> : vector<256x64xf32>
    %2 = tpu.matmul %0, %1, %cst {dimension_numbers = #tpu.dot_dimension_numbers<[1], [0], [0], [1], [0, 0, 1, 1], [], []>} : vector<256x152xbf16>, vector<152x64xbf16>, vector<256x64xf32> -> vector<256x64xf32>
    %c0_3 = arith.constant 0 : index
    %c0_4 = arith.constant 0 : index
    %3 = vector.load %arg4[%c0_3, %c0_4] : memref<1x64xf32, #tpu.memory_space<vmem>>, vector<1x64xf32>
    %4 = vector.broadcast %3 : vector<1x64xf32> to vector<256x64xf32>
    %5 = arith.mulf %2, %4 : vector<256x64xf32>
    %c0_5 = arith.constant 0 : index
    %c0_6 = arith.constant 0 : index
    %6 = vector.load %arg5[%c0_5, %c0_6] : memref<1x64xf32, #tpu.memory_space<vmem>>, vector<1x64xf32>
    %7 = vector.broadcast %6 : vector<1x64xf32> to vector<256x64xf32>
    %8 = arith.addf %5, %7 : vector<256x64xf32>
    %cst_7 = arith.constant 0.000000e+00 : f32
    %9 = vector.broadcast %cst_7 : f32 to vector<256x64xf32>
    %10 = arith.maximumf %8, %9 : vector<256x64xf32>
    %11 = arith.truncf %10 : vector<256x64xf32> to vector<256x64xbf16>
    %c0_8 = arith.constant 0 : index
    %c0_9 = arith.constant 0 : index
    %12 = vector.load %arg6[%c0_8, %c0_9] : memref<256x64xbf16, #tpu.memory_space<vmem>>, vector<256x64xbf16>
    tpu.vector_store %arg6[%c0_8, %c0_9], %11 {strides = array<i32>} : memref<256x64xbf16, #tpu.memory_space<vmem>>, vector<256x64xbf16>,
    return
  }
  func.func @transform_0(%arg0: i32, %arg1: i32) -> (i32, i32) {
    %c0_i32 = arith.constant 0 : i32
    %c0_i32_0 = arith.constant 0 : i32
    return %arg0, %c0_i32 : i32, i32
  }
  func.func @transform_1(%arg0: i32, %arg1: i32) -> (i32, i32) {
    %c0_i32 = arith.constant 0 : i32
    %c0_i32_0 = arith.constant 0 : i32
    return %c0_i32, %arg1 : i32, i32
  }
  func.func @transform_2(%arg0: i32, %arg1: i32) -> (i32, i32) {
    %c0_i32 = arith.constant 0 : i32
    %c0_i32_0 = arith.constant 0 : i32
    return %c0_i32, %arg1 : i32, i32
  }
  func.func @transform_3(%arg0: i32, %arg1: i32) -> (i32, i32) {
    %c0_i32 = arith.constant 0 : i32
    %c0_i32_0 = arith.constant 0 : i32
    return %c0_i32, %arg1 : i32, i32
  }
  func.func @transform_4(%arg0: i32, %arg1: i32) -> (i32, i32) {
    %c0_i32 = arith.constant 0 : i32
    return %arg0, %arg1 : i32, i32
  }
}

</mosaic_0001>

<bundles_post_ra>
// kernel: tpu_custom_call.1
= control target key start
LH: loop header
LB: loop body
LE: loop exit
PB: predicated region body
PF: predicated region fallthrough
CT: control target
= control target key end

     0   :  { %s1414_s15 = smov 0   ;;  %s1416_s16 = smov 0   ;;  %s1671_s0 = inlined_call_operand.vmem [shape: bf16[2048,152], index: 0, kind: input, shape index: {}]   ;;  %s1672_s1 = inlined_call_operand.vmem [shape: bf16[152,64], index: 1, kind: input, shape index: {}]   ;;  %s1673_s2 = inlined_call_operand.vmem [shape: f32[1,64], index: 2, kind: input, shape index: {}]   ;;  %s1674_s3 = inlined_call_operand.vmem [shape: f32[1,64], index: 3, kind: input, shape index: {}]   ;;  %s1675_s4 = inlined_call_operand.vmem [shape: bf16[2048,64], index: 4, kind: output, shape index: {}]  }
   0x1   :  { %s1418_s17 = smov 0  }
   0x2 LB: > { %s26_s18 = sadd.s32 1, %s1382_s16  ;;  %p1128_p0 = scmp.ge.s32.totalorder %s1386_s17, 1  ;;  %s1386_s17 = sphi %s1418_s17, %s14_s17   ;;  %s1382_s16 = sphi %s1416_s16, %s1677_s16   ;;  %s1378_s15 = sphi %s1414_s15, %s1676_s15  }
   0x3   : > { %p28_p1 = scmp.ge.s32.totalorder %s26_s18, 8  ;;  %p203_p2 = scmp.lt.s32.totalorder %s1386_s17, 9 }
   0x5   : > { %s1679_s18 = smov (%p28_p1, %s26_s18), 0  ;;  %p204_p3 = pnand %p1128_p0, %p203_p2 }
   0x6   : > { %v1306_v0 = vld [vmem:[%s1672_s1] sm:$0xff] (!%p204_p3)   ;;  %v1388_v1 = vmov (!%p204_p3), 0   ;;  %v1307_v2 = vld [vmem:[%s1672_s1 + $0x8] sm:$0xff] (!%p204_p3)   ;;  %s1129_s23 = sshll.u32 (!%p204_p3), %s1378_s15, 5  ;;  %v1308_v3 = vld [vmem:[%s1672_s1 + $0x10] sm:$0xff] (!%p204_p3)   ;;  %vm522_vm0 = vcmask (!%p204_p3), 195584  }
   0x7   : > { %207 = sbr.rel (%p204_p3) target bundleno = 326 (0x146), region = 36  ;;  %575 = vmatprep.subr.bf16.mxu0 (!%p204_p3), %v1388_v1  ;;  %1261 = vmatprep.subr.bf16.mxu1 (!%p204_p3), %v1388_v1  ;;  %p244_p4 = scmp.lt.s32.totalorder (!%p204_p3), %s1129_s23, 255  ;;  %v1309_v4 = vld [vmem:[%s1672_s1 + $0x18] sm:$0xff] (!%p204_p3)   ;;  %v1310_v7 = vld [vmem:[%s1672_s1 + $0x20] sm:$0xff] (!%p204_p3)   ;;  %v1311_v8 = vld [vmem:[%s1672_s1 + $0x28] sm:$0xff] (!%p204_p3)   ;;  %vm571_vm1 = vcmask (!%p204_p3), 1043456  }
   0x8   : > { %576 = vmatpush1.bf16.msra.mxu0 (!%p204_p3), %v1306_v0  ;;  %1271 = vmatpush1.bf16.msra.mxu1 (!%p204_p3), %v1306_v0  ;;  %v1312_v9 = vld [vmem:[%s1672_s1 + $0x30] sm:$0xff] (!%p204_p3)   ;;  %v1313_v10 = vld [vmem:[%s1672_s1 + $0x38] sm:$0xff] (!%p204_p3)   ;;  %v1314_v11 = vld [vmem:[%s1672_s1 + $0x40] sm:$0xff] (!%p204_p3)   ;;  %vm974_vm2 = vcmask (!%p204_p3), 519168  }
   0x9   : > { %577 = vmatprep.subr.bf16.mxu0 (!%p204_p3), %v1388_v1  ;;  %1262 = vmatprep.subr.bf16.mxu1 (!%p204_p3), %v1388_v1  ;;  %v1315_v12 = vld [vmem:[%s1672_s1 + $0x48] ss:$0 sps:$4 sm:$0xff] (!%p204_p3)   ;;  %v1521_v44 = vld [vmem:[%s1673_s2] ss:$0 sm:$0xff] (!%p204_p3) }
   0xa   : > { %v573_v13 = vsel (!%p204_p3), %vm571_vm1, %v1315_v12, 0  ;;  %v1526_v46 = vld [vmem:[%s1674_s3] ss:$0 sm:$0xff] (!%p204_p3) }
   0xc   : > { %578 = vmatpush1.bf16.msra.mxu0 (!%p204_p3), %v1307_v2  ;;  %1272 = vmatpush1.bf16.msra.mxu1 (!%p204_p3), %v1307_v2 }
   0xd   : > { %579 = vmatprep.subr.bf16.mxu0 (!%p204_p3), %v1388_v1  ;;  %1263 = vmatprep.subr.bf16.mxu1 (!%p204_p3), %v1388_v1 }
   0xe   : > { %s1681_s23 = smov (!%p244_p4, %s1129_s23), 255 }
   0xf   : > { %s1228_s26 = sshll.u32 %s1681_s23, 3 }
  0x10   : > { %s1447_s29 = scalar_lea.vmem %s1671_s0, %s1228_s26  ;;  %580 = vmatpush1.bf16.msra.mxu0 %v1308_v3  ;;  %1273 = vmatpush1.bf16.msra.mxu1 %v1308_v3  ;;  %s1133_s26 = sshll.u32 %s1681_s23, 2 }
  0x11   : > { %v1318_v5 = vld [vmem:[%s1447_s29 + $0x4] ss:$8 sps:$4 sm:$0xff]   ;;  %581 = vmatprep.subr.bf16.mxu0 %v1388_v1  ;;  %1264 = vmatprep.subr.bf16.mxu1 %v1388_v1  ;;  %v1316_v14 = vld [vmem:[%s1447_s29] ss:$8 sps:$4 sm:$0xff]   ;;  %v1322_v16 = vld [vmem:[%s1447_s29 + $0x14] ss:$8 sps:$4 sm:$0xff]   ;;  %s1540_s23 = scalar_lea.vmem %s1675_s4, %s1133_s26 }
  0x12   : > { %1176 = vmatprep.mubr.msk.bf16.mxu0 %vm522_vm0, %v1318_v5  ;;  %v1321_v6 = vld [vmem:[%s1447_s29 + $0x84] ss:$8 sps:$4 sm:$0xff]   ;;  %v1319_v15 = vld [vmem:[%s1447_s29 + $0x80] ss:$8 sps:$4 sm:$0xff]   ;;  %v1324_v17 = vld [vmem:[%s1447_s29 + $0x94] ss:$8 sps:$4 sm:$0xff]  }
  0x13   : > { %1184 = vmatprep.mubr.msk.bf16.mxu1 %vm522_vm0, %v1321_v6  ;;  %v1326_v18 = vld [vmem:[%s1447_s29 + $0x10] ss:$8 sps:$4 sm:$0xff]   ;;  %v1328_v20 = vld [vmem:[%s1447_s29 + $0x24] ss:$8 sps:$4 sm:$0xff]   ;;  %v1332_v22 = vld [vmem:[%s1447_s29 + $0x20] ss:$8 sps:$4 sm:$0xff]  }
  0x14   : > { %582 = vmatpush1.bf16.msra.mxu0 %v1309_v4  ;;  %1274 = vmatpush1.bf16.msra.mxu1 %v1309_v4  ;;  %v1327_v19 = vld [vmem:[%s1447_s29 + $0x90] ss:$8 sps:$4 sm:$0xff]   ;;  %v1330_v21 = vld [vmem:[%s1447_s29 + $0xa4] ss:$8 sps:$4 sm:$0xff]   ;;  %v1333_v23 = vld [vmem:[%s1447_s29 + $0xa0] ss:$8 sps:$4 sm:$0xff]  }
  0x15   : > { %583 = vmatprep.subr.bf16.mxu0 %v1388_v1  ;;  %1265 = vmatprep.subr.bf16.mxu1 %v1388_v1  ;;  %v1334_v24 = vld [vmem:[%s1447_s29 + $0x34] ss:$8 sps:$4 sm:$0xff]   ;;  %v1338_v26 = vld [vmem:[%s1447_s29 + $0x30] ss:$8 sps:$4 sm:$0xff]   ;;  %v1340_v28 = vld [vmem:[%s1447_s29 + $0x44] ss:$8 sps:$4 sm:$0xff]  }
  0x16   : > { %v1336_v25 = vld [vmem:[%s1447_s29 + $0xb4] ss:$8 sps:$4 sm:$0xff]   ;;  %v1339_v27 = vld [vmem:[%s1447_s29 + $0xb0] ss:$8 sps:$4 sm:$0xff]   ;;  %v1342_v29 = vld [vmem:[%s1447_s29 + $0xc4] ss:$8 sps:$4 sm:$0xff]  }
  0x17   : > { %v1344_v30 = vld [vmem:[%s1447_s29 + $0x40] ss:$8 sps:$4 sm:$0xff]   ;;  %v1346_v32 = vld [vmem:[%s1447_s29 + $0x54] ss:$8 sps:$4 sm:$0xff]   ;;  %v1350_v34 = vld [vmem:[%s1447_s29 + $0x50] ss:$8 sps:$4 sm:$0xff]  }
  0x18   : > { %584 = vmatpush1.bf16.msra.mxu0 %v1310_v7  ;;  %1275 = vmatpush1.bf16.msra.mxu1 %v1310_v7  ;;  %v1345_v31 = vld [vmem:[%s1447_s29 + $0xc0] ss:$8 sps:$4 sm:$0xff]   ;;  %v1348_v33 = vld [vmem:[%s1447_s29 + $0xd4] ss:$8 sps:$4 sm:$0xff]   ;;  %v1351_v35 = vld [vmem:[%s1447_s29 + $0xd0] ss:$8 sps:$4 sm:$0xff]  }
  0x19   : > { %585 = vmatprep.subr.bf16.mxu0 %v1388_v1  ;;  %1266 = vmatprep.subr.bf16.mxu1 %v1388_v1  ;;  %v1352_v36 = vld [vmem:[%s1447_s29 + $0x64] ss:$8 sps:$4 sm:$0xff]   ;;  %v1356_v38 = vld [vmem:[%s1447_s29 + $0x60] ss:$8 sps:$4 sm:$0xff]   ;;  %v1358_v40 = vld [vmem:[%s1447_s29 + $0x74] ss:$8 sps:$4 sm:$0xff]  }
  0x1a   : > { %v1354_v37 = vld [vmem:[%s1447_s29 + $0xe4] ss:$8 sps:$4 sm:$0xff]   ;;  %v1357_v39 = vld [vmem:[%s1447_s29 + $0xe0] ss:$8 sps:$4 sm:$0xff]   ;;  %v1360_v41 = vld [vmem:[%s1447_s29 + $0xf4] ss:$8 sps:$4 sm:$0xff]  }
  0x1b   : > { %v1362_v42 = vld [vmem:[%s1447_s29 + $0x70] ss:$8 sps:$4 sm:$0xff]  }
  0x1c   : > { %586 = vmatpush1.bf16.msra.mxu0 %v1311_v8  ;;  %1276 = vmatpush1.bf16.msra.mxu1 %v1311_v8  ;;  %v1363_v43 = vld [vmem:[%s1447_s29 + $0xf0] ss:$8 sps:$4 sm:$0xff]  }
  0x1d   : > { %587 = vmatprep.subr.bf16.mxu0 %v1388_v1  ;;  %1267 = vmatprep.subr.bf16.mxu1 %v1388_v1 }
  0x20   : > { %588 = vmatpush1.bf16.msra.mxu0 %v1312_v9  ;;  %1277 = vmatpush1.bf16.msra.mxu1 %v1312_v9 }
  0x21   : > { %589 = vmatprep.subr.bf16.mxu0 %v1388_v1  ;;  %1268 = vmatprep.subr.bf16.mxu1 %v1388_v1 }
  0x24   : > { %590 = vmatpush1.bf16.msra.mxu0 %v1313_v10  ;;  %1278 = vmatpush1.bf16.msra.mxu1 %v1313_v10 }
  0x25   : > { %591 = vmatprep.subr.bf16.mxu0 %v1388_v1  ;;  %1269 = vmatprep.subr.bf16.mxu1 %v1388_v1 }
  0x28   : > { %592 = vmatpush1.bf16.msra.mxu0 %v1314_v11  ;;  %1279 = vmatpush1.bf16.msra.mxu1 %v1314_v11 }
  0x29   : > { %593 = vmatprep.subr.bf16.mxu0 %v1388_v1  ;;  %1270 = vmatprep.subr.bf16.mxu1 %v1388_v1 }
  0x2c   : > { %594 = vmatpush1.bf16.msra.mxu0 %v573_v13  ;;  %1280 = vmatpush1.bf16.msra.mxu1 %v573_v13 }
  0x2f   : > { %608 = vmatmul.mubr.bf16.vlgmr.msra.gmra.mrb[0].mxu0 %v1316_v14  ;;  %672 = vmatmul.mubr.bf16.vlgmr.msra.gmra.mrb[0].mxu1 %v1319_v15 }
  0x30   : > { %1177 = vmatprep.mubr.msk.bf16.mxu0 %vm522_vm0, %v1322_v16  ;;  %1185 = vmatprep.mubr.msk.bf16.mxu1 %vm522_vm0, %v1324_v17 }
  0x37   : > { %616 = vmatmul.mubr.bf16.gmra.mrb[4].mxu0 %v1326_v18  ;;  %680 = vmatmul.mubr.bf16.gmra.mrb[4].mxu1 %v1327_v19 }
  0x38   : > { %1178 = vmatprep.mubr.msk.bf16.mxu0 %vm522_vm0, %v1328_v20  ;;  %1186 = vmatprep.mubr.msk.bf16.mxu1 %vm522_vm0, %v1330_v21 }
  0x3f   : > { %624 = vmatmul.mubr.bf16.gmra.mrb[8].mxu0 %v1332_v22  ;;  %688 = vmatmul.mubr.bf16.gmra.mrb[8].mxu1 %v1333_v23 }
  0x40   : > { %1179 = vmatprep.mubr.msk.bf16.mxu0 %vm522_vm0, %v1334_v24  ;;  %1187 = vmatprep.mubr.msk.bf16.mxu1 %vm522_vm0, %v1336_v25 }
  0x47   : > { %632 = vmatmul.mubr.bf16.gmra.mrb[12].mxu0 %v1338_v26  ;;  %696 = vmatmul.mubr.bf16.gmra.mrb[12].mxu1 %v1339_v27 }
  0x48   : > { %1180 = vmatprep.mubr.msk.bf16.mxu0 %vm522_vm0, %v1340_v28  ;;  %1188 = vmatprep.mubr.msk.bf16.mxu1 %vm522_vm0, %v1342_v29 }
  0x4f   : > { %640 = vmatmul.mubr.bf16.gmra.mrb[16].mxu0 %v1344_v30  ;;  %704 = vmatmul.mubr.bf16.gmra.mrb[16].mxu1 %v1345_v31 }
  0x50   : > { %1181 = vmatprep.mubr.msk.bf16.mxu0 %vm522_vm0, %v1346_v32  ;;  %1189 = vmatprep.mubr.msk.bf16.mxu1 %vm522_vm0, %v1348_v33 }
  0x57   : > { %648 = vmatmul.mubr.bf16.gmra.mrb[20].mxu0 %v1350_v34  ;;  %712 = vmatmul.mubr.bf16.gmra.mrb[20].mxu1 %v1351_v35 }
  0x58   : > { %1182 = vmatprep.mubr.msk.bf16.mxu0 %vm522_vm0, %v1352_v36  ;;  %1190 = vmatprep.mubr.msk.bf16.mxu1 %vm522_vm0, %v1354_v37 }
  0x5f   : > { %656 = vmatmul.mubr.bf16.gmra.mrb[24].mxu0 %v1356_v38  ;;  %720 = vmatmul.mubr.bf16.gmra.mrb[24].mxu1 %v1357_v39 }
  0x60   : > { %1183 = vmatprep.mubr.msk.bf16.mxu0 %vm522_vm0, %v1358_v40  ;;  %1191 = vmatprep.mubr.msk.bf16.mxu1 %vm522_vm0, %v1360_v41 }
  0x67   : > { %664 = vmatmul.mubr.bf16.gmra.mrb[28].mxu0 %v1362_v42  ;;  %728 = vmatmul.mubr.bf16.gmra.mrb[28].mxu1 %v1363_v43 }
 0x102   : > { %v609_v45 = vpop.f32.mrb[0].mxu0  ;;  %v673_v47 = vpop.f32.mrb[0].mxu1 }
 0x103   : > { %v743_v48 = vmul.f32 %v1521_v44, %v609_v45  ;;  %v759_v49 = vmul.f32 %v1521_v44, %v673_v47  ;;  %v611_v50 = vpop.f32.mrb[1].mxu0  ;;  %v675_v51 = vpop.f32.mrb[1].mxu1 }
 0x104   : > { %v612_v52 = vpop.f32.mrb[2].mxu0  ;;  %v676_v53 = vpop.f32.mrb[2].mxu1 }
 0x105   : > { %v782_v54 = vadd.f32 %v1526_v46, %v743_v48  ;;  %v798_v55 = vadd.f32 %v1526_v46, %v759_v49  ;;  %v744_v56 = vmul.f32 %v1521_v44, %v612_v52  ;;  %v760_v57 = vmul.f32 %v1521_v44, %v676_v53  ;;  %v614_v58 = vpop.f32.mrb[3].mxu0  ;;  %v678_v59 = vpop.f32.mrb[3].mxu1 }
 0x107   : > { %v814_v60 = vmax.f32 %v782_v54, 0.0  ;;  %v830_v61 = vmax.f32 %v798_v55, 0.0  ;;  %v783_v62 = vadd.f32 %v1526_v46, %v744_v56  ;;  %v799_v63 = vadd.f32 %v1526_v46, %v760_v57 }
 0x109   : > { %v1229_v0 = vpack.c.bf16 %v814_v60, %v814_v60  ;;  %v1245_v1 = vpack.c.bf16 %v830_v61, %v830_v61  ;;  %v815_v2 = vmax.f32 %v783_v62, 0.0  ;;  %v831_v3 = vmax.f32 %v799_v63, 0.0 }
 0x10a   : > { %v617_v4 = vpop.f32.mrb[4].mxu0  ;;  %v681_v5 = vpop.f32.mrb[4].mxu1 }
 0x10b   : > { %975 = vst.msk [vmem:[%s1540_s23] sm:$0xf] %vm974_vm2, %v1229_v0  ;;  %991 = vst.msk [vmem:[%s1540_s23 + $0x40] sm:$0xf] %vm974_vm2, %v1245_v1  ;;  %v1230_v6 = vpack.c.bf16 %v815_v2, %v815_v2  ;;  %v1246_v7 = vpack.c.bf16 %v831_v3, %v831_v3  ;;  %v745_v8 = vmul.f32 %v1521_v44, %v617_v4  ;;  %v619_v10 = vpop.f32.mrb[5].mxu0  ;;  %v683_v11 = vpop.f32.mrb[5].mxu1 }
 0x10c   : > { %v761_v9 = vmul.f32 %v1521_v44, %v681_v5  ;;  %v620_v12 = vpop.f32.mrb[6].mxu0  ;;  %v684_v13 = vpop.f32.mrb[6].mxu1 }
 0x10d   : > { %976 = vst.msk [vmem:[%s1540_s23 + $0x4] sm:$0xf] %vm974_vm2, %v1230_v6  ;;  %992 = vst.msk [vmem:[%s1540_s23 + $0x44] sm:$0xf] %vm974_vm2, %v1246_v7  ;;  %v784_v14 = vadd.f32 %v1526_v46, %v745_v8  ;;  %v746_v16 = vmul.f32 %v1521_v44, %v620_v12  ;;  %v762_v17 = vmul.f32 %v1521_v44, %v684_v13  ;;  %v622_v18 = vpop.f32.mrb[7].mxu0  ;;  %v686_v19 = vpop.f32.mrb[7].mxu1 }
 0x10e   : > { %v800_v15 = vadd.f32 %v1526_v46, %v761_v9 }
 0x10f   : > { %v816_v20 = vmax.f32 %v784_v14, 0.0  ;;  %v785_v22 = vadd.f32 %v1526_v46, %v746_v16  ;;  %v801_v23 = vadd.f32 %v1526_v46, %v762_v17 }
 0x110   : > { %v832_v21 = vmax.f32 %v800_v15, 0.0 }
 0x111   : > { %v1231_v24 = vpack.c.bf16 %v816_v20, %v816_v20  ;;  %v817_v26 = vmax.f32 %v785_v22, 0.0  ;;  %v833_v27 = vmax.f32 %v801_v23, 0.0 }
 0x112   : > { %v1247_v25 = vpack.c.bf16 %v832_v21, %v832_v21  ;;  %v625_v28 = vpop.f32.mrb[8].mxu0  ;;  %v689_v29 = vpop.f32.mrb[8].mxu1 }
 0x113   : > { %977 = vst.msk [vmem:[%s1540_s23 + $0x8] sm:$0xf] %vm974_vm2, %v1231_v24  ;;  %v1232_v30 = vpack.c.bf16 %v817_v26, %v817_v26  ;;  %v1248_v31 = vpack.c.bf16 %v833_v27, %v833_v27  ;;  %v747_v32 = vmul.f32 %v1521_v44, %v625_v28  ;;  %v763_v33 = vmul.f32 %v1521_v44, %v689_v29  ;;  %v627_v34 = vpop.f32.mrb[9].mxu0  ;;  %v691_v35 = vpop.f32.mrb[9].mxu1 }
 0x114   : > { %993 = vst.msk [vmem:[%s1540_s23 + $0x48] sm:$0xf] %vm974_vm2, %v1247_v25  ;;  %v628_v36 = vpop.f32.mrb[10].mxu0  ;;  %v692_v37 = vpop.f32.mrb[10].mxu1 }
 0x115   : > { %978 = vst.msk [vmem:[%s1540_s23 + $0xc] sm:$0xf] %vm974_vm2, %v1232_v30  ;;  %994 = vst.msk [vmem:[%s1540_s23 + $0x4c] sm:$0xf] %vm974_vm2, %v1248_v31  ;;  %v786_v38 = vadd.f32 %v1526_v46, %v747_v32  ;;  %v802_v39 = vadd.f32 %v1526_v46, %v763_v33  ;;  %v748_v40 = vmul.f32 %v1521_v44, %v628_v36  ;;  %v630_v42 = vpop.f32.mrb[11].mxu0  ;;  %v694_v43 = vpop.f32.mrb[11].mxu1 }
 0x116   : > { %v764_v41 = vmul.f32 %v1521_v44, %v692_v37 }
 0x117   : > { %v818_v45 = vmax.f32 %v786_v38, 0.0  ;;  %v834_v47 = vmax.f32 %v802_v39, 0.0  ;;  %v787_v48 = vadd.f32 %v1526_v46, %v748_v40 }
 0x118   : > { %v803_v49 = vadd.f32 %v1526_v46, %v764_v41 }
 0x119   : > { %v1233_v50 = vpack.c.bf16 %v818_v45, %v818_v45  ;;  %v1249_v51 = vpack.c.bf16 %v834_v47, %v834_v47  ;;  %v819_v52 = vmax.f32 %v787_v48, 0.0 }
 0x11a   : > { %v835_v53 = vmax.f32 %v803_v49, 0.0  ;;  %v633_v54 = vpop.f32.mrb[12].mxu0  ;;  %v697_v55 = vpop.f32.mrb[12].mxu1 }
 0x11b   : > { %979 = vst.msk [vmem:[%s1540_s23 + $0x10] sm:$0xf] %vm974_vm2, %v1233_v50  ;;  %995 = vst.msk [vmem:[%s1540_s23 + $0x50] sm:$0xf] %vm974_vm2, %v1249_v51  ;;  %v1234_v56 = vpack.c.bf16 %v819_v52, %v819_v52  ;;  %v749_v58 = vmul.f32 %v1521_v44, %v633_v54  ;;  %v765_v59 = vmul.f32 %v1521_v44, %v697_v55  ;;  %v635_v60 = vpop.f32.mrb[13].mxu0  ;;  %v699_v61 = vpop.f32.mrb[13].mxu1 }
 0x11c   : > { %v1250_v57 = vpack.c.bf16 %v835_v53, %v835_v53  ;;  %v636_v62 = vpop.f32.mrb[14].mxu0  ;;  %v700_v63 = vpop.f32.mrb[14].mxu1 }
 0x11d   : > { %980 = vst.msk [vmem:[%s1540_s23 + $0x14] sm:$0xf] %vm974_vm2, %v1234_v56  ;;  %v788_v0 = vadd.f32 %v1526_v46, %v749_v58  ;;  %v804_v1 = vadd.f32 %v1526_v46, %v765_v59  ;;  %v750_v2 = vmul.f32 %v1521_v44, %v636_v62  ;;  %v766_v3 = vmul.f32 %v1521_v44, %v700_v63  ;;  %v638_v4 = vpop.f32.mrb[15].mxu0  ;;  %v702_v5 = vpop.f32.mrb[15].mxu1 }
 0x11e   : > { %996 = vst.msk [vmem:[%s1540_s23 + $0x54] sm:$0xf] %vm974_vm2, %v1250_v57 }
 0x11f   : > { %v820_v6 = vmax.f32 %v788_v0, 0.0  ;;  %v836_v7 = vmax.f32 %v804_v1, 0.0  ;;  %v789_v8 = vadd.f32 %v1526_v46, %v750_v2  ;;  %v805_v9 = vadd.f32 %v1526_v46, %v766_v3 }
 0x121   : > { %v1235_v10 = vpack.c.bf16 %v820_v6, %v820_v6  ;;  %v1251_v11 = vpack.c.bf16 %v836_v7, %v836_v7  ;;  %v821_v12 = vmax.f32 %v789_v8, 0.0  ;;  %v837_v13 = vmax.f32 %v805_v9, 0.0 }
 0x122   : > { %v641_v14 = vpop.f32.mrb[16].mxu0  ;;  %v705_v15 = vpop.f32.mrb[16].mxu1 }
 0x123   : > { %981 = vst.msk [vmem:[%s1540_s23 + $0x18] sm:$0xf] %vm974_vm2, %v1235_v10  ;;  %997 = vst.msk [vmem:[%s1540_s23 + $0x58] sm:$0xf] %vm974_vm2, %v1251_v11  ;;  %v1236_v16 = vpack.c.bf16 %v821_v12, %v821_v12  ;;  %v1252_v17 = vpack.c.bf16 %v837_v13, %v837_v13  ;;  %v751_v18 = vmul.f32 %v1521_v44, %v641_v14  ;;  %v643_v20 = vpop.f32.mrb[17].mxu0  ;;  %v707_v21 = vpop.f32.mrb[17].mxu1 }
 0x124   : > { %v767_v19 = vmul.f32 %v1521_v44, %v705_v15  ;;  %v644_v22 = vpop.f32.mrb[18].mxu0  ;;  %v708_v23 = vpop.f32.mrb[18].mxu1 }
 0x125   : > { %982 = vst.msk [vmem:[%s1540_s23 + $0x1c] sm:$0xf] %vm974_vm2, %v1236_v16  ;;  %998 = vst.msk [vmem:[%s1540_s23 + $0x5c] sm:$0xf] %vm974_vm2, %v1252_v17  ;;  %v790_v24 = vadd.f32 %v1526_v46, %v751_v18  ;;  %v752_v26 = vmul.f32 %v1521_v44, %v644_v22  ;;  %v768_v27 = vmul.f32 %v1521_v44, %v708_v23  ;;  %v646_v28 = vpop.f32.mrb[19].mxu0  ;;  %v710_v29 = vpop.f32.mrb[19].mxu1 }
 0x126   : > { %v806_v25 = vadd.f32 %v1526_v46, %v767_v19 }
 0x127   : > { %v822_v30 = vmax.f32 %v790_v24, 0.0  ;;  %v791_v32 = vadd.f32 %v1526_v46, %v752_v26  ;;  %v807_v33 = vadd.f32 %v1526_v46, %v768_v27 }
 0x128   : > { %v838_v31 = vmax.f32 %v806_v25, 0.0 }
 0x129   : > { %v1237_v34 = vpack.c.bf16 %v822_v30, %v822_v30  ;;  %v823_v36 = vmax.f32 %v791_v32, 0.0  ;;  %v839_v37 = vmax.f32 %v807_v33, 0.0 }
 0x12a   : > { %v1253_v35 = vpack.c.bf16 %v838_v31, %v838_v31  ;;  %v649_v38 = vpop.f32.mrb[20].mxu0  ;;  %v713_v39 = vpop.f32.mrb[20].mxu1 }
 0x12b   : > { %983 = vst.msk [vmem:[%s1540_s23 + $0x20] sm:$0xf] %vm974_vm2, %v1237_v34  ;;  %v1238_v40 = vpack.c.bf16 %v823_v36, %v823_v36  ;;  %v1254_v41 = vpack.c.bf16 %v839_v37, %v839_v37  ;;  %v753_v42 = vmul.f32 %v1521_v44, %v649_v38  ;;  %v769_v43 = vmul.f32 %v1521_v44, %v713_v39  ;;  %v651_v45 = vpop.f32.mrb[21].mxu0  ;;  %v715_v47 = vpop.f32.mrb[21].mxu1 }
 0x12c   : > { %999 = vst.msk [vmem:[%s1540_s23 + $0x60] sm:$0xf] %vm974_vm2, %v1253_v35  ;;  %v652_v48 = vpop.f32.mrb[22].mxu0  ;;  %v716_v49 = vpop.f32.mrb[22].mxu1 }
 0x12d   : > { %984 = vst.msk [vmem:[%s1540_s23 + $0x24] sm:$0xf] %vm974_vm2, %v1238_v40  ;;  %1000 = vst.msk [vmem:[%s1540_s23 + $0x64] sm:$0xf] %vm974_vm2, %v1254_v41  ;;  %v792_v50 = vadd.f32 %v1526_v46, %v753_v42  ;;  %v808_v51 = vadd.f32 %v1526_v46, %v769_v43  ;;  %v754_v52 = vmul.f32 %v1521_v44, %v652_v48  ;;  %v654_v54 = vpop.f32.mrb[23].mxu0  ;;  %v718_v55 = vpop.f32.mrb[23].mxu1 }
 0x12e   : > { %v770_v53 = vmul.f32 %v1521_v44, %v716_v49 }
 0x12f   : > { %v824_v56 = vmax.f32 %v792_v50, 0.0  ;;  %v840_v57 = vmax.f32 %v808_v51, 0.0  ;;  %v793_v58 = vadd.f32 %v1526_v46, %v754_v52 }
 0x130   : > { %v809_v59 = vadd.f32 %v1526_v46, %v770_v53 }
 0x131   : > { %v1239_v60 = vpack.c.bf16 %v824_v56, %v824_v56  ;;  %v1255_v61 = vpack.c.bf16 %v840_v57, %v840_v57  ;;  %v825_v62 = vmax.f32 %v793_v58, 0.0 }
 0x132   : > { %v841_v63 = vmax.f32 %v809_v59, 0.0  ;;  %v657_v0 = vpop.f32.mrb[24].mxu0  ;;  %v721_v1 = vpop.f32.mrb[24].mxu1 }
 0x133   : > { %985 = vst.msk [vmem:[%s1540_s23 + $0x28] sm:$0xf] %vm974_vm2, %v1239_v60  ;;  %1001 = vst.msk [vmem:[%s1540_s23 + $0x68] sm:$0xf] %vm974_vm2, %v1255_v61  ;;  %v1240_v2 = vpack.c.bf16 %v825_v62, %v825_v62  ;;  %v755_v4 = vmul.f32 %v1521_v44, %v657_v0  ;;  %v771_v5 = vmul.f32 %v1521_v44, %v721_v1  ;;  %v659_v6 = vpop.f32.mrb[25].mxu0  ;;  %v723_v7 = vpop.f32.mrb[25].mxu1 }
 0x134   : > { %v1256_v3 = vpack.c.bf16 %v841_v63, %v841_v63  ;;  %v660_v8 = vpop.f32.mrb[26].mxu0  ;;  %v724_v9 = vpop.f32.mrb[26].mxu1 }
 0x135   : > { %986 = vst.msk [vmem:[%s1540_s23 + $0x2c] sm:$0xf] %vm974_vm2, %v1240_v2  ;;  %v794_v10 = vadd.f32 %v1526_v46, %v755_v4  ;;  %v810_v11 = vadd.f32 %v1526_v46, %v771_v5  ;;  %v756_v12 = vmul.f32 %v1521_v44, %v660_v8  ;;  %v772_v13 = vmul.f32 %v1521_v44, %v724_v9  ;;  %v662_v14 = vpop.f32.mrb[27].mxu0  ;;  %v726_v15 = vpop.f32.mrb[27].mxu1 }
 0x136   : > { %1002 = vst.msk [vmem:[%s1540_s23 + $0x6c] sm:$0xf] %vm974_vm2, %v1256_v3 }
 0x137   : > { %v826_v16 = vmax.f32 %v794_v10, 0.0  ;;  %v842_v17 = vmax.f32 %v810_v11, 0.0  ;;  %v795_v18 = vadd.f32 %v1526_v46, %v756_v12  ;;  %v811_v19 = vadd.f32 %v1526_v46, %v772_v13 }
 0x139   : > { %v1241_v20 = vpack.c.bf16 %v826_v16, %v826_v16  ;;  %v1257_v21 = vpack.c.bf16 %v842_v17, %v842_v17  ;;  %v827_v22 = vmax.f32 %v795_v18, 0.0  ;;  %v843_v23 = vmax.f32 %v811_v19, 0.0 }
 0x13a   : > { %v665_v24 = vpop.f32.mrb[28].mxu0  ;;  %v729_v25 = vpop.f32.mrb[28].mxu1 }
 0x13b   : > { %987 = vst.msk [vmem:[%s1540_s23 + $0x30] sm:$0xf] %vm974_vm2, %v1241_v20  ;;  %1003 = vst.msk [vmem:[%s1540_s23 + $0x70] sm:$0xf] %vm974_vm2, %v1257_v21  ;;  %v1242_v26 = vpack.c.bf16 %v827_v22, %v827_v22  ;;  %v1258_v27 = vpack.c.bf16 %v843_v23, %v843_v23  ;;  %v757_v28 = vmul.f32 %v1521_v44, %v665_v24  ;;  %v667_v30 = vpop.f32.mrb[29].mxu0  ;;  %v731_v31 = vpop.f32.mrb[29].mxu1 }
 0x13c   : > { %v773_v29 = vmul.f32 %v1521_v44, %v729_v25  ;;  %v668_v32 = vpop.f32.mrb[30].mxu0  ;;  %v732_v33 = vpop.f32.mrb[30].mxu1 }
 0x13d   : > { %988 = vst.msk [vmem:[%s1540_s23 + $0x34] sm:$0xf] %vm974_vm2, %v1242_v26  ;;  %1004 = vst.msk [vmem:[%s1540_s23 + $0x74] sm:$0xf] %vm974_vm2, %v1258_v27  ;;  %v796_v34 = vadd.f32 %v1526_v46, %v757_v28  ;;  %v758_v36 = vmul.f32 %v1521_v44, %v668_v32  ;;  %v774_v37 = vmul.f32 %v1521_v44, %v732_v33  ;;  %v670_v38 = vpop.f32.mrb[31].mxu0  ;;  %v734_v39 = vpop.f32.mrb[31].mxu1 }
 0x13e   : > { %v812_v35 = vadd.f32 %v1526_v46, %v773_v29 }
 0x13f   : > { %v828_v40 = vmax.f32 %v796_v34, 0.0  ;;  %v797_v42 = vadd.f32 %v1526_v46, %v758_v36  ;;  %v813_v43 = vadd.f32 %v1526_v46, %v774_v37 }
 0x140   : > { %v844_v41 = vmax.f32 %v812_v35, 0.0 }
 0x141   : > { %v1243_v45 = vpack.c.bf16 %v828_v40, %v828_v40  ;;  %v829_v48 = vmax.f32 %v797_v42, 0.0  ;;  %v845_v49 = vmax.f32 %v813_v43, 0.0 }
 0x142   : > { %v1259_v47 = vpack.c.bf16 %v844_v41, %v844_v41 }
 0x143   : > { %989 = vst.msk [vmem:[%s1540_s23 + $0x38] sm:$0xf] %vm974_vm2, %v1243_v45  ;;  %v1244_v50 = vpack.c.bf16 %v829_v48, %v829_v48  ;;  %v1260_v51 = vpack.c.bf16 %v845_v49, %v845_v49 }
 0x144   : > { %1005 = vst.msk [vmem:[%s1540_s23 + $0x78] sm:$0xf] %vm974_vm2, %v1259_v47 }
 0x145   : > { %990 = vst.msk [vmem:[%s1540_s23 + $0x3c] sm:$0xf] %vm974_vm2, %v1244_v50  ;;  %1006 = vst.msk [vmem:[%s1540_s23 + $0x7c] sm:$0xf] %vm974_vm2, %v1260_v51 }
 0x146 PF: > { %s14_s17 = sadd.s32 1, %s1386_s17   ;;  %s1676_s15 = smov %s1382_s16 }
 0x147   : > { %p11_p5 = scmp.ge.s32.totalorder %s14_s17, 10   ;;  %s1677_s16 = smov %s1679_s18 }
 0x149   :  { %13 = sbr.rel (!%p11_p5) target bundleno = 2 (0x2), region = 75 }

</bundles_post_ra>
